<compile_context>
chip_gen: v7x
topology: tpu7x:2x2x1
jax: 0.10.0
libtpu: 0.0.40
codegen_flags: <defaults>
</compile_context>

<pallas_src>
import functools

import jax
import jax.numpy as jnp
from jax.experimental import pallas as pl
from jax.experimental.pallas import tpu as pltpu


def _round_up(a, b):
    return ((a + b - 1) // b) * b


def _layer_kernel(x_ref, w_ref, b_ref, o_ref, *, activation):
    # Cast x to bf16 in VMEM (VPU convert is free vs. HBM traffic), matmul on the
    # MXU with f32 accumulation, f32 bias + activation epilogue, narrow store.
    x = x_ref[...].astype(jnp.bfloat16)
    y = jnp.dot(x, w_ref[...], preferred_element_type=jnp.float32)
    y = y + b_ref[...]  # (1, N) f32 broadcasts over rows
    if activation == "relu":
        y = jnp.maximum(y, 0.0)
    elif activation == "sigmoid":
        y = jax.nn.sigmoid(y)
    else:
        raise ValueError(f"unsupported activation: {activation}")
    o_ref[...] = y.astype(o_ref.dtype)


def prepare_layer_params(w, b):
    """One-time parameter prep (hoisted out of the per-call path).

    w: (K, N) float32 -> (K, N) bfloat16   (MXU-native)
    b: (N,)   float32 -> (1, N) float32    (f32 epilogue; v5e VPU/EUP have no bf16)
    """
    return w.astype(jnp.bfloat16), b.reshape(1, -1).astype(jnp.float32)


@functools.partial(jax.jit, static_argnames=("activation", "block_m", "out_dtype"))
def layer_forward(x, w_prepared, b_prepared, activation, *,
                  block_m=4096, out_dtype=jnp.bfloat16):
    """Pallas equivalent of Layer(nn.Linear(K, N), activation).forward(x).

    x:          (M, K) float32
    w_prepared: (K, N) bfloat16   (from prepare_layer_params)
    b_prepared: (1, N) float32    (from prepare_layer_params)
    """
    M, K = x.shape
    Kw, N = w_prepared.shape
    assert K == Kw, (K, Kw)

    # ---- M tile selection -------------------------------------------------
    # * tiny M: one full-extent tile (multiple of 8 for the f32 x block).
    # * otherwise: multiple of 16 (bf16 out sublane pack), capped at block_m,
    #   and sized so grid_m >= 2 -> both v7x TensorCores get a share.
    if M <= 16:
        tm = _round_up(M, 8)
    else:
        half = _round_up(pl.cdiv(M, 2), 16)
        tm = max(16, min(block_m, half))
    grid_m = pl.cdiv(M, tm)
    m_pad = grid_m * tm
    if m_pad != M:
        # Pad only the ragged tail tile (no-op when M is a multiple of tm).
        x = jnp.pad(x, ((0, m_pad - M), (0, 0)))

    kernel = functools.partial(_layer_kernel, activation=activation)

    out = pl.pallas_call(
        kernel,
        out_shape=jax.ShapeDtypeStruct((m_pad, N), out_dtype),
        grid=(grid_m,),
        in_specs=[
            pl.BlockSpec((tm, K), lambda i: (i, 0)),   # x tile (pipelined, f32)
            pl.BlockSpec((K, N), lambda i: (0, 0)),    # weight (resident, bf16)
            pl.BlockSpec((1, N), lambda i: (0, 0)),    # bias   (resident, f32)
        ],
        out_specs=pl.BlockSpec((tm, N), lambda i: (i, 0)),
        compiler_params=pltpu.CompilerParams(
            dimension_semantics=("parallel",),
        ),
    )(x, w_prepared, b_prepared)

    if m_pad != M:
        out = out[:M]
    return out


if __name__ == "__main__":
    key = jax.random.PRNGKey(0)
    kx, kw, kb, kx2 = jax.random.split(key, 4)

    batch, in_features, out_features = 8, 32, 64

    x = jax.random.normal(kx, (batch, in_features), dtype=jnp.float32)
    # Deterministic parameter init (synthetic, not a checkpoint load).
    w = jax.random.normal(kw, (in_features, out_features), dtype=jnp.float32) * 0.1
    b = jax.random.normal(kb, (out_features,), dtype=jnp.float32) * 0.1

    # Parameters prepared once (pad/cast hoisted out of the forward path).
    w_p, b_p = prepare_layer_params(w, b)

    ok = True
    for act in ("relu", "sigmoid"):
        y = jax.block_until_ready(layer_forward(x, w_p, b_p, act))
        lin = x @ w + b
        ref = jnp.maximum(lin, 0.0) if act == "relu" else jax.nn.sigmoid(lin)
        # Loose tolerance: bf16 matmul inputs + bf16 output vs f32 module math.
        ok = ok and bool(
            jnp.allclose(y.astype(jnp.float32), ref, atol=5e-2, rtol=5e-2)
        )

    # Exercise the multi-tile (grid_m > 1) path at a modest M.
    big_m = 160
    x_big = jax.random.normal(kx2, (big_m, in_features), dtype=jnp.float32)
    y_big = jax.block_until_ready(layer_forward(x_big, w_p, b_p, "relu"))
    ref_big = jnp.maximum(x_big @ w + b, 0.0)
    ok = ok and (y_big.shape == (big_m, out_features))
    ok = ok and bool(
        jnp.allclose(y_big.astype(jnp.float32), ref_big, atol=5e-2, rtol=5e-2)
    )

    if ok:
        print("KERNEL_OK")
</pallas_src>

<mosaic_0001>
module attributes {stable_mosaic.version = 11 : i64} {
  func.func @_layer_kernel(%arg0: i32, %arg1: memref<8x32xf32, #tpu.memory_space<vmem>>, %arg2: memref<32x64xbf16, #tpu.memory_space<vmem>>, %arg3: memref<1x64xf32, #tpu.memory_space<vmem>>, %arg4: memref<8x64xbf16, #tpu.memory_space<vmem>>) attributes {dimension_semantics = [#tpu.dimension_semantics<parallel>], iteration_bounds = array<i64: 1>, scalar_prefetch = 0 : i64, scratch_operands = 0 : i64, tpu.core_type = #tpu.core_type<tc>, window_params = [{transform_indices = @transform_0, window_bounds = array<i64: 8, 32>}, {pipeline_mode = #tpu.pipeline_mode<synchronous>, transform_indices = @transform_1, window_bounds = array<i64: 32, 64>}, {pipeline_mode = #tpu.pipeline_mode<synchronous>, transform_indices = @transform_2, window_bounds = array<i64: 1, 64>}, {transform_indices = @transform_3, window_bounds = array<i64: 8, 64>}]} {
    %c0 = arith.constant 0 : index
    %c0_0 = arith.constant 0 : index
    %0 = vector.load %arg1[%c0, %c0_0] : memref<8x32xf32, #tpu.memory_space<vmem>>, vector<8x32xf32>
    %1 = arith.truncf %0 : vector<8x32xf32> to vector<8x32xbf16>
    %c0_1 = arith.constant 0 : index
    %c0_2 = arith.constant 0 : index
    %2 = vector.load %arg2[%c0_1, %c0_2] : memref<32x64xbf16, #tpu.memory_space<vmem>>, vector<32x64xbf16>
    %cst = arith.constant dense<0.000000e+00> : vector<8x64xf32>
    %3 = tpu.matmul %1, %2, %cst {dimension_numbers = #tpu.dot_dimension_numbers<[1], [0], [0], [1], [0, 0, 1, 1], [], []>} : vector<8x32xbf16>, vector<32x64xbf16>, vector<8x64xf32> -> vector<8x64xf32>
    %c0_3 = arith.constant 0 : index
    %c0_4 = arith.constant 0 : index
    %4 = vector.load %arg3[%c0_3, %c0_4] : memref<1x64xf32, #tpu.memory_space<vmem>>, vector<1x64xf32>
    %5 = vector.broadcast %4 : vector<1x64xf32> to vector<8x64xf32>
    %6 = arith.addf %3, %5 : vector<8x64xf32>
    %cst_5 = arith.constant 0.000000e+00 : f32
    %7 = vector.broadcast %cst_5 : f32 to vector<8x64xf32>
    %8 = arith.maximumf %6, %7 : vector<8x64xf32>
    %9 = arith.truncf %8 : vector<8x64xf32> to vector<8x64xbf16>
    %c0_6 = arith.constant 0 : index
    %c0_7 = arith.constant 0 : index
    %10 = vector.load %arg4[%c0_6, %c0_7] : memref<8x64xbf16, #tpu.memory_space<vmem>>, vector<8x64xbf16>
    tpu.vector_store %arg4[%c0_6, %c0_7], %9 {strides = array<i32>} : memref<8x64xbf16, #tpu.memory_space<vmem>>, vector<8x64xbf16>,
    return
  }
  func.func @transform_0(%arg0: i32) -> (i32, i32) {
    %c0_i32 = arith.constant 0 : i32
    %c0_i32_0 = arith.constant 0 : i32
    return %arg0, %c0_i32 : i32, i32
  }
  func.func @transform_1(%arg0: i32) -> (i32, i32) {
    %c0_i32 = arith.constant 0 : i32
    %c0_i32_0 = arith.constant 0 : i32
    %c0_i32_1 = arith.constant 0 : i32
    return %c0_i32, %c0_i32_0 : i32, i32
  }
  func.func @transform_2(%arg0: i32) -> (i32, i32) {
    %c0_i32 = arith.constant 0 : i32
    %c0_i32_0 = arith.constant 0 : i32
    %c0_i32_1 = arith.constant 0 : i32
    return %c0_i32, %c0_i32_0 : i32, i32
  }
  func.func @transform_3(%arg0: i32) -> (i32, i32) {
    %c0_i32 = arith.constant 0 : i32
    %c0_i32_0 = arith.constant 0 : i32
    return %arg0, %c0_i32 : i32, i32
  }
}

</mosaic_0001>

<bundles_post_ra>
// kernel: layer_forward.1
= control target key start
LH: loop header
LB: loop body
LE: loop exit
PB: predicated region body
PF: predicated region fallthrough
CT: control target
= control target key end

     0   :  { %8 = vsyncpa [#allocation3], 0  ;;  %s300_s0 = inlined_call_operand.hbm [shape: f32[8,32], index: 0, kind: input, shape index: {}]   ;;  %s301_s1 = inlined_call_operand.hbm [shape: bf16[32,64], index: 1, kind: input, shape index: {}]   ;;  %s302_s2 = inlined_call_operand.vmem [shape: f32[1,64], index: 2, kind: input, shape index: {}]   ;;  %s303_s3 = inlined_call_operand.hbm [shape: bf16[8,64], index: 3, kind: output, shape index: {}]  }
   0x1   :  { %9 = vsyncpa [#allocation6], 0 }
   0x2   :  { %10 = vsyncpa [#allocation4], 0  ;;  %s227_s12 = smov [#allocation2]   ;;  %s228_s14 = smov [#allocation5]  }
   0x3   :  { %s17_s13 = sshll.u32 %s227_s12, 4  ;;  %s26_s15 = sshll.u32 %s228_s14, 4  ;;  %s18_s13 = int_to_ptr.vmem [resolvable:$true] %s17_s13  ;;  %s254_s15 = int_to_ptr.vmem [resolvable:$true] %s26_s15 }
   0x4   :  { %s155_s18 = scalar_lea.hbm %s300_s0, 128 }
   0x5   :  { %p156_p0 = scmp.ne.s32.totalorder %s300_s0, %s155_s18  ;;  %p159_p1 = scmp.lt.u32.totalorder %s155_s18, %s300_s0 }
   0x7   :  { %p161_p2 = pnand %p159_p1, %p156_p0 }
   0x9   :  { %164 = shalt.err (!%p161_p2)
}
   0xa   :  { %s165_s23 = scalar_lea.vmem %s18_s13, 128  ;;  %p170_p4 = scmp.lt.s32.totalorder %s18_s13, %s18_s13 }
   0xb   :  { %p166_p3 = scmp.ne.s32.totalorder %s18_s13, %s165_s23  ;;  %p171_p5 = scmp.lt.s32.totalorder %s165_s23, %s165_s23 }
   0xd   :  { %p172_p6 = por %p171_p5, %p170_p4 }
   0xf   :  { %p173_p7 = pnand %p172_p6, %p166_p3 }
  0x11   :  { %176 = shalt.err (!%p173_p7)
}
  0x12   :  { %20 = dma.hbm_to_vmem [thread:$0]  %s300_s0, 128, %s18_s13, [#allocation3]  }
  0x13   :  { %s177_s28 = scalar_lea.hbm %s301_s1, 256 }
  0x14   :  { %p178_p8 = scmp.ne.s32.totalorder %s301_s1, %s177_s28  ;;  %p181_p9 = scmp.lt.u32.totalorder %s177_s28, %s301_s1 }
  0x16   :  { %p183_p10 = pnand %p181_p9, %p178_p8 }
  0x18   :  { %186 = shalt.err (!%p183_p10)
}
  0x19   :  { %s187_s6 = scalar_lea.vmem %s254_s15, 256  ;;  %p192_p12 = scmp.lt.s32.totalorder %s254_s15, %s254_s15 }
  0x1a   :  { %p188_p11 = scmp.ne.s32.totalorder %s254_s15, %s187_s6  ;;  %p193_p13 = scmp.lt.s32.totalorder %s187_s6, %s187_s6 }
  0x1c   :  { %p194_p0 = por %p193_p13, %p192_p12 }
  0x1e   :  { %p195_p1 = pnand %p194_p0, %p188_p11 }
  0x20   :  { %198 = shalt.err (!%p195_p1)
}
  0x21   :  { %s229_s0 = smov 64   ;;  %s230_s7 = smov 4  }
  0x22   :  { %32 = dma.hbm_to_vmem [thread:$0]  %s301_s1, 256, %s254_s15, [#allocation6], %s229_s0, %s229_s0, %s230_s7  }
  0x23   :  { %221 = dma.done.wait [#allocation3], 128  }
  0x24   :  { %222 = vsyncadd [#allocation3], 4294967168 }
  0x25   :  { %223 = dma.done.wait [#allocation6], 256  }
  0x26   :  { %224 = vsyncadd [#allocation6], 4294967040  ;;  %v231_v0 = vmov 0.0   ;;  %vm232_vm0 = vmmov 0   ;;  %v153_v1 = vld [vmem:[#allocation5] sm:$0xff]   ;;  %v154_v2 = vld [vmem:[#allocation5 + $0x8] sm:$0xff]  }
  0x27   :  { %138 = vmatprep.subr.bf16.mxu0 %v231_v0  ;;  %142 = vmatprep.mubr.msk.bf16.mxu0 %vm232_vm0, %v231_v0  ;;  %v42_v3 = vld [vmem:[#allocation2] sm:$0xff]  ;;  %vm67_vm1 = vcmask 261120   ;;  %s233_s1 = smov [#allocation7]   ;;  %vm113_vm2 = vcmask 519168  }
  0x28   :  { %139 = vmatpush3.bf16.msra.mxu0 %v153_v1  ;;  %v43_v4 = vpack.c.bf16 %v42_v3, %v42_v3  ;;  %v131_v5 = vld [vmem:[%s302_s2] ss:$0 sm:$0xff]  ;;  %s121_s12 = sshll.u32 %s233_s1, 4  ;;  %s122_s12 = int_to_ptr.vmem [resolvable:$true] %s121_s12 }
  0x29   :  { %140 = vmatprep.subr.bf16.mxu0 %v231_v0  ;;  %s199_s13 = scalar_lea.vmem %s122_s12, 64  ;;  %p204_p3 = scmp.lt.s32.totalorder %s122_s12, %s122_s12 }
  0x2a   :  { %p200_p2 = scmp.ne.s32.totalorder %s122_s12, %s199_s13  ;;  %p205_p4 = scmp.lt.s32.totalorder %s199_s13, %s199_s13 }
  0x2c   :  { %141 = vmatpush3.bf16.msra.mxu0 %v154_v2  ;;  %p206_p5 = por %p205_p4, %p204_p3 }
  0x2e   :  { %p207_p6 = pnand %p206_p5, %p200_p2 }
  0x2f   :  { %143 = vmatmul.mubr.msk.bf16.vlgmr.msra.gmra.mrb[0].mxu0 %vm67_vm1, %v43_v4 }
 0x102   :  { %v105_v6 = vpop.f32.mrb[0].mxu0 }
 0x103   :  { %v106_v7 = vadd.f32 %v131_v5, %v105_v6  ;;  %v144_v8 = vpop.f32.mrb[1].mxu0 }
 0x104   :  { %v108_v9 = vpop.f32.mrb[2].mxu0 }
 0x105   :  { %v111_v10 = vmax.f32 %v106_v7, 0.0  ;;  %v145_v11 = vpop.f32.mrb[3].mxu0 }
 0x107   :  { %v112_v12 = vpack.c.bf16 %v111_v10, %v111_v10 }
 0x109   :  { %114 = vst.msk [vmem:[#allocation7] sm:$0xf] %vm113_vm2, %v112_v12 }
 0x10a   :  { %210 = shalt.err (!%p207_p6)
}
 0x10b   :  { %s211_s15 = scalar_lea.hbm %s303_s3, 64 }
 0x10c   :  { %p212_p7 = scmp.ne.s32.totalorder %s303_s3, %s211_s15  ;;  %p215_p8 = scmp.lt.u32.totalorder %s211_s15, %s303_s3 }
 0x10e   :  { %p217_p9 = pnand %p215_p8, %p212_p7 }
 0x110   :  { %220 = shalt.err (!%p217_p9)
}
 0x111   :  { %124 = dma.vmem_to_hbm [thread:$0]  %s122_s12, 64, %s303_s3, [#allocation4]  }
 0x112   :  { %225 = dma.done.wait [#allocation4], 64  }
 0x113   :  { %226 = vsyncadd [#allocation4], 4294967232 }
 0x114   :  { %128 = vsyncpa [#allocation3], 1 }
 0x115   :  { %129 = vsyncpa [#allocation6], 1 }
 0x116   :  { %130 = vsyncpa [#allocation4], 1 }

</bundles_post_ra>
